<compile_context>
chip_gen: v6e
topology: v6e:2x2x1
jax: 0.10.0
libtpu: 0.0.40
codegen_flags: <defaults>
</compile_context>

<pallas_src>
import functools
import math

import numpy as np
import jax
import jax.numpy as jnp
from jax.experimental import pallas as pl
from jax.experimental.pallas import tpu as pltpu


# Cody–Waite split of 2*pi: HI has only 12 significant mantissa bits, so
# k * HI is exact in f32 for |k| < 4096 (args up to ~2.5e4 rad).
_INV_TWO_PI = 0.15915494309189535
_TWO_PI_HI = 6.283203125                # 3217 / 512, exactly representable
_TWO_PI_LO = -1.7817820413523e-05       # 2*pi - _TWO_PI_HI


def _timestep_embed_kernel(t_ref, freqs_ref, out_ref, *, half, odd):
    # t_ref:     (TILE_N, 1)       input dtype (cast to f32 in-kernel)
    # freqs_ref: (1, half)         f32 constant table
    # out_ref:   (TILE_N, outdim)  f32
    t = t_ref[...].astype(jnp.float32)
    args = t * freqs_ref[...]                       # (TILE_N, half)  VPU
    # Range reduction to [-pi, pi] so EUP cos/sin stay accurate for large t.
    k = jnp.floor(args * _INV_TWO_PI + 0.5)         # VPU
    r = args - k * _TWO_PI_HI                        # exact-ish (HI has 12 bits)
    r = r - k * _TWO_PI_LO
    out_ref[:, :half] = jnp.cos(r)                   # EUP
    out_ref[:, half:2 * half] = jnp.sin(r)           # EUP
    if odd:
        # Zero-pad last column for odd outdim (matches torch behavior).
        out_ref[:, 2 * half:] = jnp.zeros((t_ref.shape[0], 1), out_ref.dtype)


def _freq_table(half, max_period=10000.0):
    """f32 frequency table, built once at trace time as a numpy constant."""
    return (
        np.exp(-math.log(max_period) * np.arange(half, dtype=np.float64) / half)
        .astype(np.float32)
        .reshape(1, half)
    )


def concat_timestep_embedder_nd(x, outdim, max_period=10000.0, tile_n=1024):
    """JAX/Pallas equivalent of ConcatTimestepEmbedderND.forward."""
    if x.ndim == 1:
        x = x[:, None]
    assert x.ndim == 2
    b, dims = x.shape
    n = b * dims
    half = outdim // 2

    if half == 0:
        # outdim in {0, 1}: embedding is entirely zero padding (matches torch).
        return jnp.zeros((b, dims * outdim), jnp.float32)

    freqs = jnp.asarray(_freq_table(half, max_period))

    # einops 'b d -> (b d)' is a row-major flatten (free metadata reshape);
    # the .float() cast is done in-kernel.
    t = x.reshape(n, 1)

    # Tile over N; sublane-dim block must be a multiple of 8 or the full dim.
    tile_n = min(tile_n, n)
    if tile_n != n and tile_n % 8 != 0:
        tile_n = max(8, (tile_n // 8) * 8)
    grid = (pl.cdiv(n, tile_n),)

    kernel = functools.partial(
        _timestep_embed_kernel, half=half, odd=bool(outdim % 2))

    emb = pl.pallas_call(
        kernel,
        out_shape=jax.ShapeDtypeStruct((n, outdim), jnp.float32),
        grid=grid,
        in_specs=[
            pl.BlockSpec((tile_n, 1), lambda i: (i, 0)),
            pl.BlockSpec((1, half), lambda i: (0, 0)),
        ],
        out_specs=pl.BlockSpec((tile_n, outdim), lambda i: (i, 0)),
        compiler_params=pltpu.CompilerParams(
            dimension_semantics=("parallel",),   # shards tiles across v7x's 2 TCs
        ),
    )(t, freqs)

    # einops '(b d) d2 -> b (d d2)' == row-major reshape (free).
    return emb.reshape(b, dims * outdim)


def _reference_f64(x, outdim, max_period=10000.0):
    """float64 numpy ground truth using the SAME f32 freq table as the kernel."""
    x = np.asarray(x, dtype=np.float32)
    if x.ndim == 1:
        x = x[:, None]
    b, dims = x.shape
    half = outdim // 2
    if half == 0:
        return np.zeros((b, dims * outdim), np.float64)
    freqs = _freq_table(half, max_period).astype(np.float64)
    t = x.reshape(b * dims, 1).astype(np.float64)
    args = t * freqs
    emb = np.concatenate([np.cos(args), np.sin(args)], axis=-1)
    if outdim % 2:
        emb = np.concatenate([emb, np.zeros((b * dims, 1), np.float64)], axis=-1)
    return emb.reshape(b, dims * outdim)


def _check(out, ref, atol=5e-4):
    out = np.asarray(out, dtype=np.float64)
    err = np.max(np.abs(out - ref))
    assert out.shape == ref.shape, (out.shape, ref.shape)
    assert err <= atol, f"max abs err {err} > {atol}"


if __name__ == "__main__":
    key = jax.random.PRNGKey(0)

    # 1) SDXL-like shape: add_time_ids with batch=2, 4 scalar dims, outdim=256,
    #    values up to ~1000 (image sizes / crop coords), single-tile grid.
    B, D, OUTDIM = 2, 4, 256
    x = jax.random.uniform(key, (B, D), dtype=jnp.float32) * 1000.0
    out = jax.block_until_ready(concat_timestep_embedder_nd(x, OUTDIM))
    assert out.shape == (B, D * OUTDIM), out.shape
    assert out.dtype == jnp.float32
    _check(out, _reference_f64(np.asarray(x), OUTDIM))

    # 2) Larger N with odd outdim and a small tile: exercises multi-tile grid,
    #    partial final block, and the in-kernel zero-pad column.
    key2 = jax.random.PRNGKey(1)
    B2, D2, OUTDIM2 = 300, 3, 129                # N = 900 -> tiles of 256 (4 tiles)
    x2 = jax.random.uniform(key2, (B2, D2), dtype=jnp.float32) * 1000.0
    out2 = jax.block_until_ready(
        concat_timestep_embedder_nd(x2, OUTDIM2, tile_n=256))
    assert out2.shape == (B2, D2 * OUTDIM2), out2.shape
    _check(out2, _reference_f64(np.asarray(x2), OUTDIM2))

    # 3) 1-D input promotion path (x.ndim == 1), small outdim.
    x3 = jnp.arange(8, dtype=jnp.float32) * 125.0
    out3 = jax.block_until_ready(concat_timestep_embedder_nd(x3, 32))
    assert out3.shape == (8, 32), out3.shape
    _check(out3, _reference_f64(np.asarray(x3), 32))

    print("KERNEL_OK")
</pallas_src>

<mosaic_0001>
module attributes {stable_mosaic.version = 11 : i64} {
  func.func @_timestep_embed_kernel(%arg0: i32, %arg1: memref<8x1xf32, #tpu.memory_space<vmem>>, %arg2: memref<1x128xf32, #tpu.memory_space<vmem>>, %arg3: memref<8x256xf32, #tpu.memory_space<vmem>>) attributes {dimension_semantics = [#tpu.dimension_semantics<parallel>], iteration_bounds = array<i64: 1>, scalar_prefetch = 0 : i64, scratch_operands = 0 : i64, tpu.core_type = #tpu.core_type<tc>, window_params = [{transform_indices = @transform_0, window_bounds = array<i64: 8, 1>}, {pipeline_mode = #tpu.pipeline_mode<synchronous>, transform_indices = @transform_1, window_bounds = array<i64: 1, 128>}, {transform_indices = @transform_2, window_bounds = array<i64: 8, 256>}]} {
    %c0 = arith.constant 0 : index
    %c0_0 = arith.constant 0 : index
    %0 = vector.load %arg1[%c0, %c0_0] : memref<8x1xf32, #tpu.memory_space<vmem>>, vector<8x1xf32>
    %c0_1 = arith.constant 0 : index
    %c0_2 = arith.constant 0 : index
    %1 = vector.load %arg2[%c0_1, %c0_2] : memref<1x128xf32, #tpu.memory_space<vmem>>, vector<1x128xf32>
    %2 = vector.broadcast %0 : vector<8x1xf32> to vector<8x128xf32>
    %3 = vector.broadcast %1 : vector<1x128xf32> to vector<8x128xf32>
    %4 = arith.mulf %2, %3 : vector<8x128xf32>
    %cst = arith.constant 0.159154937 : f32
    %5 = vector.broadcast %cst : f32 to vector<8x128xf32>
    %6 = arith.mulf %4, %5 : vector<8x128xf32>
    %cst_3 = arith.constant 5.000000e-01 : f32
    %7 = vector.broadcast %cst_3 : f32 to vector<8x128xf32>
    %8 = arith.addf %6, %7 : vector<8x128xf32>
    %9 = math.floor %8 : vector<8x128xf32>
    %cst_4 = arith.constant 6.28320313 : f32
    %10 = vector.broadcast %cst_4 : f32 to vector<8x128xf32>
    %11 = arith.mulf %9, %10 : vector<8x128xf32>
    %12 = arith.subf %4, %11 : vector<8x128xf32>
    %cst_5 = arith.constant -1.78178198E-5 : f32
    %13 = vector.broadcast %cst_5 : f32 to vector<8x128xf32>
    %14 = arith.mulf %9, %13 : vector<8x128xf32>
    %15 = arith.subf %12, %14 : vector<8x128xf32>
    %16 = math.cos %15 : vector<8x128xf32>
    %c0_6 = arith.constant 0 : index
    %c0_7 = arith.constant 0 : index
    %17 = vector.load %arg3[%c0_6, %c0_7] : memref<8x256xf32, #tpu.memory_space<vmem>>, vector<8x128xf32>
    tpu.vector_store %arg3[%c0_6, %c0_7], %16 {strides = array<i32>} : memref<8x256xf32, #tpu.memory_space<vmem>>, vector<8x128xf32>,
    %18 = math.sin %15 : vector<8x128xf32>
    %c0_8 = arith.constant 0 : index
    %c128 = arith.constant 128 : index
    %19 = vector.load %arg3[%c0_8, %c128] : memref<8x256xf32, #tpu.memory_space<vmem>>, vector<8x128xf32>
    tpu.vector_store %arg3[%c0_8, %c128], %18 {strides = array<i32>} : memref<8x256xf32, #tpu.memory_space<vmem>>, vector<8x128xf32>,
    return
  }
  func.func @transform_0(%arg0: i32) -> (i32, i32) {
    %c0_i32 = arith.constant 0 : i32
    %c0_i32_0 = arith.constant 0 : i32
    return %arg0, %c0_i32 : i32, i32
  }
  func.func @transform_1(%arg0: i32) -> (i32, i32) {
    %c0_i32 = arith.constant 0 : i32
    %c0_i32_0 = arith.constant 0 : i32
    %c0_i32_1 = arith.constant 0 : i32
    return %c0_i32, %c0_i32_0 : i32, i32
  }
  func.func @transform_2(%arg0: i32) -> (i32, i32) {
    %c0_i32 = arith.constant 0 : i32
    %c0_i32_0 = arith.constant 0 : i32
    return %arg0, %c0_i32 : i32, i32
  }
}

</mosaic_0001>

<bundles_post_ra>
// kernel: tpu_custom_call.1
= control target key start
LH: loop header
LB: loop body
LE: loop exit
PB: predicated region body
PF: predicated region fallthrough
CT: control target
= control target key end

     0   :  { %v304_v1 = vmov 0   ;;  %s357_s0 = inlined_call_operand.vmem [shape: f32[8,1], index: 0, kind: input, shape index: {}]   ;;  %s358_s1 = inlined_call_operand.vmem [shape: f32[1,128], index: 1, kind: input, shape index: {}]   ;;  %s359_s2 = inlined_call_operand.hbm [shape: f32[8,256], index: 2, kind: output, shape index: {}]  }
   0x1   :  { %v12_v0 = vld [vmem:[%s357_s0] sm:$0xff]  ;;  %277 = vset.pattern.permute.xlu0 %v304_v1 }
   0x2   :  { %7 = vsyncpa [#allocation3], 0  ;;  %16 = vperm.xlu0 %277, %v12_v0   ;;  %v256_v2 = vld [vmem:[%s358_s1] ss:$0 sm:$0xff]  ;;  %v305_v23 = vmov 2102212464  }
   0x3   :  { %v306_v25 = vmov 920167782   ;;  %v307_v29 = vmov 1326507024   ;;  %v308_v31 = vmov 683565275  }
   0x4   :  { %v309_v33 = vmov 2475754826   ;;  %v310_v36 = vmov 2131351028   ;;  %s311_s0 = smov [#allocation2]  }
   0x5   :  { %s248_s1 = sshll.u32 %s311_s0, 4  ;;  %s249_s1 = int_to_ptr.vmem [resolvable:$true] %s248_s1 }
   0x6   :  { %s282_s13 = scalar_lea.vmem %s249_s1, 256  ;;  %p287_p1 = scmp.lt.s32.totalorder %s249_s1, %s249_s1 }
   0x7   :  { %p283_p0 = scmp.ne.s32.totalorder %s249_s1, %s282_s13  ;;  %p288_p2 = scmp.lt.s32.totalorder %s282_s13, %s282_s13 }
   0x9   :  { %p289_p3 = por %p288_p2, %p287_p1 }
   0xb   :  { %p290_p4 = pnand %p289_p3, %p283_p0 }
  0x7d   :  { %v17_v3 = vpop.permute.xlu0 %16 }
  0x7e   :  { %v25_v4 = vmul.f32 %v256_v2, %v17_v3 }
  0x80   :  { %v26_v5 = vmul.f32 0.15915494, %v25_v4 }
  0x82   :  { %v27_v6 = vadd.f32 0.5, %v26_v5 }
  0x84   :  { %v28_v7 = vfloor.f32 %v27_v6 }
  0x86   :  { %v29_v8 = vmul.f32 6.283203, %v28_v7  ;;  %v31_v10 = vmul.f32 -1.781782e-05, %v28_v7 }
  0x88   :  { %v30_v9 = vsub.f32 %v25_v4, %v29_v8 }
  0x8a   :  { %v333_v11 = vsub.f32 %v30_v9, %v31_v10 }
  0x8c   :  { %v36_v12 = vand.u32 2139095040, %v333_v11  ;;  %v33_v13 = vand.u32 2147483647, %v333_v11  ;;  %vm35_vm7 = vcmp.lt.s32.totalorder %v333_v11, 0  ;;  %vm125_vm15 = vweird.f32 %v333_v11 }
  0x8e   :  { %v37_v14 = vshrl.u32 %v36_v12, 23  ;;  %v40_v16 = vand.u32 8388607, %v33_v13  ;;  %vm34_vm8 = vcmp.le.f32.partialorder %v33_v13, 0.7853982 }
  0x90   :  { %v257_v15 = vadd.s32 4294967169, %v37_v14  ;;  %v41_v19 = vor.u32 8388608, %v40_v16 }
  0x92   :  { %v43_v17 = vadd.s32 1, %v257_v15  ;;  %v81_v27 = vshll.u32 %v41_v19, 8 }
  0x94   :  { %vm44_vm0 = vcmp.gt.s32.totalorder %v43_v17, 0 }
  0x95   :  { %v45_v18 = vsel %vm44_vm0, %v43_v17, 0 }
  0x96   :  { %v47_v20 = vand.u32 31, %v45_v18  ;;  %v46_v21 = vshrl.u32 %v45_v18, 5 }
  0x98   :  { %v48_v22 = vsub.s32 32, %v47_v20  ;;  %v59_v24 = vshll.u32 %v305_v23, %v47_v20  ;;  %v62_v26 = vshll.u32 %v306_v25, %v47_v20  ;;  %v50_v32 = vshll.u32 %v308_v31, %v47_v20 }
  0x99   :  { %v53_v35 = vshll.u32 %v309_v33, %v47_v20  ;;  %v56_v38 = vshll.u32 %v310_v36, %v47_v20  ;;  %vm68_vm1 = vcmp.lt.s32.totalorder %v46_v21, 4  ;;  %vm65_vm2 = vcmp.lt.s32.totalorder %v46_v21, 1 }
  0x9a   :  { %v60_v28 = vshrl.u32 %v306_v25, %v48_v22  ;;  %v63_v30 = vshrl.u32 %v307_v29, %v48_v22  ;;  %v51_v34 = vshrl.u32 %v309_v33, %v48_v22  ;;  %v54_v37 = vshrl.u32 %v310_v36, %v48_v22 }
  0x9b   :  { %v57_v39 = vshrl.u32 %v305_v23, %v48_v22  ;;  %v49_v43 = vshrl.u32 %v308_v31, %v48_v22  ;;  %vm66_vm3 = vcmp.lt.s32.totalorder %v46_v21, 2  ;;  %vm67_vm4 = vcmp.lt.s32.totalorder %v46_v21, 3 }
  0x9c   :  { %v61_v40 = vor.u32 %v60_v28, %v59_v24  ;;  %v64_v41 = vor.u32 %v63_v30, %v62_v26  ;;  %v52_v42 = vor.u32 %v51_v34, %v50_v32  ;;  %v55_v44 = vor.u32 %v54_v37, %v53_v35 }
  0x9d   :  { %v58_v45 = vor.u32 %v57_v39, %v56_v38 }
  0x9e   :  { %v74_v46 = vsel %vm68_vm1, %v61_v40, 920167782  ;;  %v78_v47 = vsel %vm68_vm1, %v64_v41, 1326507024  ;;  %v73_v49 = vsel %vm65_vm2, %v52_v42, %v55_v44  ;;  %v69_v52 = vsel %vm65_vm2, %v49_v43, %v52_v42 }
  0x9f   :  { %v70_v48 = vsel %vm68_vm1, %v58_v45, 2102212464  ;;  %v75_v50 = vsel %vm67_vm4, %v58_v45, %v74_v46  ;;  %v77_v51 = vsel %vm65_vm2, %v55_v44, %v58_v45  ;;  %v79_v55 = vsel %vm67_vm4, %v61_v40, %v78_v47 }
  0xa0   :  { %v71_v53 = vsel %vm67_vm4, %v55_v44, %v70_v48  ;;  %v76_v54 = vsel %vm66_vm3, %v73_v49, %v75_v50  ;;  %v80_v56 = vsel %vm66_vm3, %v77_v51, %v79_v55 }
  0xa1   :  { %v339_v57 = vmul.u32.u64.low %v81_v27, %v76_v54  ;;  %v340_v58 = vmul.u32.u64.high %v81_v27, %v76_v54, %v339_v57  ;;  %v342_v59 = vmul.u32.u64.low %v81_v27, %v80_v56  ;;  %v343_v60 = vmul.u32.u64.high %v81_v27, %v80_v56, %v342_v59 }
  0xa2   :  { %v72_v61 = vsel %vm66_vm3, %v69_v52, %v71_v53 }
  0xa3   :  { %v91_v62 = vadd.s32 1, %v340_v58  ;;  %v88_v63 = vmul.u32 %v81_v27, %v72_v61  ;;  %vm90_vm5 = vc.u32 %v343_v60, %v339_v57  ;;  %v89_v12 = vadd.s32 %v339_v57, %v343_v60 }
  0xa5   :  { %v92_v0 = vsel %vm90_vm5, %v91_v62, %v340_v58 }
  0xa6   :  { %v93_v1 = vadd.s32 %v92_v0, %v88_v63 }
  0xa8   :  { %v94_v2 = vadd.s32 536870912, %v93_v1 }
  0xaa   :  { %v95_v3 = vshrl.u32 %v94_v2, 30 }
  0xac   :  { %v96_v4 = vshll.u32 %v95_v3, 30  ;;  %v119_v26 = vsub.s32 4, %v95_v3 }
  0xae   :  { %v97_v5 = vsub.s32 %v93_v1, %v96_v4  ;;  %v120_v29 = vsel %vm35_vm7, %v119_v26, %v95_v3 }
  0xaf   :  { %v122_v30 = vsel %vm34_vm8, 0, %v120_v29 }
  0xb0   :  { %v99_v6 = vsub.s32 0, %v97_v5  ;;  %v230_v31 = vadd.s32 3, %v122_v30  ;;  %v126_v32 = vand.u32 3, %v122_v30 }
  0xb2   :  { %v258_v7 = vmin.u32 %v99_v6, %v97_v5  ;;  %v231_v33 = vand.u32 3, %v230_v31  ;;  %vm131_vm9 = vcmp.eq.s32.totalorder %v126_v32, 2  ;;  %vm128_vm11 = vcmp.eq.s32.totalorder %v126_v32, 0 }
  0xb3   :  { %vm127_vm13 = vcmp.lt.s32.totalorder %v126_v32, 2 }
  0xb4   :  { %v101_v8 = vclz %v258_v7  ;;  %vm236_vm10 = vcmp.eq.s32.totalorder %v231_v33, 2  ;;  %vm233_vm12 = vcmp.eq.s32.totalorder %v231_v33, 0  ;;  %vm232_vm14 = vcmp.lt.s32.totalorder %v231_v33, 2 }
  0xb6   :  { %v259_v9 = vadd.s32 4294967294, %v101_v8 }
  0xb8   :  { %vm260_vm6 = vcmp.lt.s32.totalorder %v259_v9, 0 }
  0xb9   :  { %v104_v10 = vsel %vm260_vm6, 0, %v259_v9 }
  0xba   :  { %v105_v14 = vsub.s32 32, %v104_v10  ;;  %v109_v15 = vsub.s32 4294967266, %v104_v10  ;;  %v106_v16 = vshll.u32 %v97_v5, %v104_v10 }
  0xbc   :  { %v107_v17 = vshrl.u32 %v89_v12, %v105_v14  ;;  %v110_v18 = vadd.s32 127, %v109_v15 }
  0xbe   :  { %v108_v19 = vor.u32 %v107_v17, %v106_v16  ;;  %v111_v20 = vshll.u32 %v110_v18, 23 }
  0xc0   :  { %v112_v21 = vor.u32 4788187, %v111_v20  ;;  %v115_v23 = vcvt.s32.f32 %v108_v19 }
  0xc2   :  { %v113_v22 = vand.u32 2147483647, %v112_v21 }
  0xc4   :  { %v116_v24 = vmul.f32 %v115_v23, %v113_v22 }
  0xc6   :  { %v117_v25 = vxor.u32 2147483648, %v116_v24 }
  0xc8   :  { %v118_v27 = vsel %vm35_vm7, %v117_v25, %v116_v24 }
  0xc9   :  { %v121_v28 = vsel %vm34_vm8, %v333_v11, %v118_v27 }
  0xca   :  { %278 = vcosq.f32 %v121_v28 }
  0xcb   :  { %280 = vsinq.f32 %v121_v28 }
  0xd7   :  { %v279_v34 = vpop.eup %278 }
  0xd8   :  { %v281_v35 = vpop.eup %280  ;;  %v132_v36 = vxor.u32 2147483648, %v279_v34 }
  0xd9   :  { %v129_v37 = vxor.u32 2147483648, %v281_v35 }
  0xda   :  { %v133_v13 = vsel %vm131_vm9, %v132_v36, %v281_v35  ;;  %v238_v38 = vsel %vm236_vm10, %v132_v36, %v281_v35 }
  0xdb   :  { %v130_v39 = vsel %vm128_vm11, %v279_v34, %v129_v37  ;;  %v235_v40 = vsel %vm233_vm12, %v279_v34, %v129_v37 }
  0xdc   :  { %v134_v41 = vsel %vm127_vm13, %v130_v39, %v133_v13  ;;  %v239_v42 = vsel %vm232_vm14, %v235_v40, %v238_v38 }
  0xdd   :  { %v135_v43 = vsel %vm125_vm15, nan, %v134_v41  ;;  %v240_v44 = vsel %vm125_vm15, nan, %v239_v42 }
  0xde   :  { %136 = vst [vmem:[#allocation2] sm:$0xff] %v135_v43  ;;  %241 = vst [vmem:[#allocation2 + $0x8] sm:$0xff] %v240_v44 }
  0xdf   :  { %293 = shalt.err (!%p290_p4)
}
  0xe0   :  { %251 = dma.vmem_to_hbm [thread:$0]  %s249_s1, 256, %s359_s2, [#allocation3]  }
  0xe1   :  { %302 = dma.done.wait [#allocation3], 256  }
  0xe2   :  { %303 = vsyncadd [#allocation3], 4294967040 }
  0xe3   :  { %255 = vsyncpa [#allocation3], 1 }

</bundles_post_ra>
